<compile_context>
chip_gen: v7x
topology: tpu7x:2x2x1
jax: 0.10.0
libtpu: 0.0.40
codegen_flags: <defaults>
</compile_context>

<pallas_src>
import jax
import jax.numpy as jnp
from jax.experimental import pallas as pl
from jax.experimental.pallas import tpu as pltpu


_LANE = 128                       # lane (last-dim) width of a vreg
_DEFAULT_SCOPED_VMEM = 16 << 20   # v5e default scoped limit (v6e/v7x: 32 MiB)
_VMEM_SOFT_BUDGET = 40 << 20      # keep resident/tiled plans under this
_VMEM_LIMIT_CAP = 56 << 20        # never request more (v7x physical = 64 MiB/TC)


def _round_up(n, m):
    return ((n + m - 1) // m) * m


def _cdiv(a, b):
    return -(-a // b)


def _maybe_lane_pad(d):
    """Pad d to a multiple of 128 only when the amplification is <= 2x."""
    dp = _round_up(d, _LANE)
    return dp if dp <= 2 * d else d


def _two_layer_kernel(x_ref, w1_ref, b1_ref, w2_ref, b2_ref, o_ref):
    """One batch tile: o = sigmoid(x @ W1 + b1) @ W2 + b2."""
    # fc1: MXU matmul, f32 accumulation.
    h = jnp.dot(x_ref[...], w1_ref[...], preferred_element_type=jnp.float32)
    # Bias add (VPU) + sigmoid (EUP) stay in f32 (v5e VPU/EUP have no bf16).
    h = jax.nn.sigmoid(h + b1_ref[...])                  # (TB, Hp)
    # fc2: cast activations back to the weight compute dtype for the MXU.
    out = jnp.dot(h.astype(w2_ref.dtype), w2_ref[...],
                  preferred_element_type=jnp.float32)
    o_ref[...] = (out + b2_ref[...]).astype(o_ref.dtype)  # (TB, D_out)


def make_two_layer_net(w1, b1, w2, b2, *, batch_tile=1024,
                       compute_dtype=jnp.float32):
    """Build a jitted forward `x -> fc2(sigmoid(fc1(x)))`.

    w1: (D_in, H), w2: (H, D_out) -- pre-transposed vs nn.Linear's (out, in)
    b1: (H,), b2: (D_out,)

    Weight/bias padding and dtype casts happen ONCE here (hoisted out of the
    per-call path); the per-call forward only touches x.  For non-toy D_in/H
    on v6e/v7x use compute_dtype=jnp.bfloat16 (f32 accumulation is kept).
    """
    cdt = jnp.dtype(compute_dtype)
    itemsize = cdt.itemsize
    sub = 16 if itemsize == 2 else 8            # packed-sublane multiple
    assert batch_tile % sub == 0, (
        f"batch_tile={batch_tile} must be a multiple of {sub} for "
        f"compute_dtype={cdt.name}")

    D_in, H = w1.shape
    H2, D_out = w2.shape
    assert H2 == H and b1.size == H and b2.size == D_out

    # Lane-pad only when amplification <= 2x; otherwise keep the true dim
    # (block dim == full array dim is legal) and accept masked vld/vst.
    Dp_in, Hp, Dp_out = (_maybe_lane_pad(d) for d in (D_in, H, D_out))

    # ---- one-time parameter prep (never re-done per forward) --------------
    w1p = jnp.zeros((Dp_in, Hp), cdt).at[:D_in, :H].set(w1.astype(cdt))
    # Zero W2 rows for padded hidden lanes are REQUIRED for correctness:
    # those lanes hold sigmoid(0) = 0.5 and must not leak into real outputs.
    w2p = jnp.zeros((Hp, Dp_out), cdt).at[:H, :D_out].set(w2.astype(cdt))
    b1p = jnp.zeros((1, Hp), jnp.float32).at[:, :H].set(
        b1.reshape(1, H).astype(jnp.float32))
    b2p = jnp.zeros((1, Dp_out), jnp.float32).at[:, :D_out].set(
        b2.reshape(1, D_out).astype(jnp.float32))

    w_bytes = (Dp_in * Hp + Hp * Dp_out) * itemsize + (Hp + Dp_out) * 4

    def _need_bytes(rows, bufs):
        # bufs = pipeline buffer count (1 = grid-less resident path,
        #        2 = default double-buffering on the grid path).
        io = rows * (Dp_in * itemsize + Dp_out * 4)   # x tile + f32 out tile
        live = rows * (Hp + Dp_out) * 4               # hidden + fc2 acc values
        return bufs * (w_bytes + io) + live

    def _forward(x, w1p, b1p, w2p, b2p):
        B = x.shape[0]
        assert x.shape == (B, D_in)

        # TODO(synk): add a K/N-tiled fallback (grid over Hp / Dp_out with an
        # f32 accumulator scratch) for hidden sizes where W1/W2 cannot stay
        # fully VMEM-resident (threshold is 2x lower on v7x's 64 MiB VMEM).
        if _need_bytes(sub, 2) > _VMEM_SOFT_BUDGET:
            raise NotImplementedError(
                "weights too large for the VMEM-resident TwoLayerNet kernel")

        # ---- batch tiling: minimize padding, prefer even tile counts -------
        Bp_res = _round_up(B, sub)
        resident = (Bp_res <= batch_tile
                    and _need_bytes(Bp_res, 1) <= _VMEM_SOFT_BUDGET)
        if resident:
            TB, n_tiles = Bp_res, 1
            need = _need_bytes(TB, 1)
        else:
            n_tiles = _cdiv(B, batch_tile)
            # v7x has 2 TensorCores: an odd tile count load-imbalances the
            # "parallel" batch axis.  Use the next-lower even count when the
            # resulting tile stays within 1.5x batch_tile
            # (e.g. B=600, batch_tile=256 -> 2 tiles of 304, not 3 of 256).
            if n_tiles > 1 and n_tiles % 2 == 1:
                tb_even = _round_up(_cdiv(B, n_tiles - 1), sub)
                if (2 * tb_even <= 3 * batch_tile
                        and _need_bytes(tb_even, 2) <= _VMEM_SOFT_BUDGET):
                    n_tiles -= 1
            while True:
                TB = _round_up(_cdiv(B, n_tiles), sub)
                need = _need_bytes(TB, 2)
                if need <= _VMEM_SOFT_BUDGET or TB <= sub:
                    break
                n_tiles *= 2          # stays / becomes even
        Bp = TB * n_tiles

        # ---- per-call input prep: only x is touched ------------------------
        if Bp == B and Dp_in == D_in and x.dtype == cdt:
            xp = x
        elif Bp == B and Dp_in == D_in:
            xp = x.astype(cdt)
        else:
            xp = jnp.zeros((Bp, Dp_in), cdt).at[:B, :D_in].set(x.astype(cdt))

        cost = pl.CostEstimate(
            flops=2 * B * (D_in * H + H * D_out),
            transcendentals=B * H,
            bytes_accessed=((B * D_in + B * D_out) * 4
                            + (D_in * H + H * D_out) * itemsize
                            + (H + D_out) * 4),
        )
        out_shape = jax.ShapeDtypeStruct((Bp, Dp_out), jnp.float32)

        cp_kwargs = {}
        if need > _DEFAULT_SCOPED_VMEM:
            # v5e's default scoped-VMEM limit is only 16 MiB (32 on v6e/v7x);
            # raise it explicitly so big resident tiles keep their residency.
            cp_kwargs["vmem_limit_bytes"] = min(
                int(need * 1.25) + (1 << 20), _VMEM_LIMIT_CAP)

        if n_tiles == 1:
            # Small batch: grid-less, everything VMEM-resident -- no pipeline
            # prologue/epilogue, no double-buffering of the tiny operands.
            yp = pl.pallas_call(
                _two_layer_kernel,
                out_shape=out_shape,
                in_specs=[pl.BlockSpec(
                    memory_space=pltpu.MemorySpace.VMEM)] * 5,
                out_specs=pl.BlockSpec(memory_space=pltpu.MemorySpace.VMEM),
                compiler_params=pltpu.CompilerParams(**cp_kwargs),
                cost_estimate=cost,
            )(xp, w1p, b1p, w2p, b2p)
        else:
            # Batch-tiled path: x/out tiles stream over a "parallel" batch
            # axis (both TensorCores on v7x); weight/bias specs keep block
            # index (0, 0) every step so they are DMA'd once and stay
            # resident.  (Further VMEM headroom at real sizes: single-buffer
            # the constant-index weight specs via pipeline_mode.)
            yp = pl.pallas_call(
                _two_layer_kernel,
                out_shape=out_shape,
                grid=(n_tiles,),
                in_specs=[
                    pl.BlockSpec((TB, Dp_in), lambda i: (i, 0)),
                    pl.BlockSpec((Dp_in, Hp), lambda i: (0, 0)),
                    pl.BlockSpec((1, Hp), lambda i: (0, 0)),
                    pl.BlockSpec((Hp, Dp_out), lambda i: (0, 0)),
                    pl.BlockSpec((1, Dp_out), lambda i: (0, 0)),
                ],
                out_specs=pl.BlockSpec((TB, Dp_out), lambda i: (i, 0)),
                compiler_params=pltpu.CompilerParams(
                    dimension_semantics=("parallel",), **cp_kwargs),
                cost_estimate=cost,
            )(xp, w1p, b1p, w2p, b2p)

        if Bp == B and Dp_out == D_out:
            return yp
        return yp[:B, :D_out]

    # One jit around pad + kernel + slice so XLA fuses the wrapper ops.
    fwd = jax.jit(_forward)
    return lambda x: fwd(x, w1p, b1p, w2p, b2p)


def init_linear(key, fan_in, fan_out):
    """Deterministic init mimicking nn.Linear: U(-1/sqrt(fan_in), 1/sqrt(fan_in)).
    Returned weight is (fan_in, fan_out), i.e. already transposed for x @ W."""
    kw, kb = jax.random.split(key)
    bound = 1.0 / jnp.sqrt(float(fan_in))
    w = jax.random.uniform(kw, (fan_in, fan_out), jnp.float32, -bound, bound)
    b = jax.random.uniform(kb, (fan_out,), jnp.float32, -bound, bound)
    return w, b


if __name__ == "__main__":
    # Small shapes consistent with the module's forward: x is (batch, D_in).
    D_in, H, D_out = 32, 64, 16

    key = jax.random.PRNGKey(0)
    kx, k1, k2, kx2 = jax.random.split(key, 4)

    w1, b1 = init_linear(k1, D_in, H)
    w2, b2 = init_linear(k2, H, D_out)

    def ref_fwd(x):
        # Pure-JAX reference of the PyTorch forward: fc2(sigmoid(fc1(x))).
        return jax.nn.sigmoid(x @ w1 + b1) @ w2 + b2

    # --- small batch: grid-less, fully-resident path (weights padded once) ---
    fwd_small = make_two_layer_net(w1, b1, w2, b2, batch_tile=1024)
    x_small = jax.random.normal(kx, (8, D_in), jnp.float32)
    y_small = jax.block_until_ready(fwd_small(x_small))
    assert y_small.shape == (8, D_out)
    assert jnp.allclose(y_small, ref_fwd(x_small), atol=1e-5, rtol=1e-5)

    # --- larger batch: batch-tiled parallel-grid path.  batch_tile=256 forces
    #     the grid path; B=600 -> 2 tiles of 304 rows (even split across two
    #     TensorCores, only 8 padded rows instead of 168). ---
    fwd_big = make_two_layer_net(w1, b1, w2, b2, batch_tile=256)
    x_big = jax.random.normal(kx2, (600, D_in), jnp.float32)
    y_big = jax.block_until_ready(fwd_big(x_big))
    assert y_big.shape == (600, D_out)
    assert jnp.allclose(y_big, ref_fwd(x_big), atol=1e-5, rtol=1e-5)

    print("KERNEL_OK")
</pallas_src>

<mosaic_0001>
module attributes {stable_mosaic.version = 11 : i64} {
  func.func @_two_layer_kernel(%arg0: memref<8x32xf32, #tpu.memory_space<vmem>>, %arg1: memref<32x128xf32, #tpu.memory_space<vmem>>, %arg2: memref<1x128xf32, #tpu.memory_space<vmem>>, %arg3: memref<128x16xf32, #tpu.memory_space<vmem>>, %arg4: memref<1x16xf32, #tpu.memory_space<vmem>>, %arg5: memref<8x16xf32, #tpu.memory_space<vmem>>) attributes {dimension_semantics = [], scalar_prefetch = 0 : i64, scratch_operands = 0 : i64, tpu.core_type = #tpu.core_type<tc>} {
    %c0 = arith.constant 0 : index
    %c0_0 = arith.constant 0 : index
    %0 = vector.load %arg0[%c0, %c0_0] : memref<8x32xf32, #tpu.memory_space<vmem>>, vector<8x32xf32>
    %c0_1 = arith.constant 0 : index
    %c0_2 = arith.constant 0 : index
    %1 = vector.load %arg1[%c0_1, %c0_2] : memref<32x128xf32, #tpu.memory_space<vmem>>, vector<32x128xf32>
    %cst = arith.constant dense<0.000000e+00> : vector<8x128xf32>
    %2 = tpu.matmul %0, %1, %cst {dimension_numbers = #tpu.dot_dimension_numbers<[1], [0], [0], [1], [0, 0, 1, 1], [], []>} : vector<8x32xf32>, vector<32x128xf32>, vector<8x128xf32> -> vector<8x128xf32>
    %c0_3 = arith.constant 0 : index
    %c0_4 = arith.constant 0 : index
    %3 = vector.load %arg2[%c0_3, %c0_4] : memref<1x128xf32, #tpu.memory_space<vmem>>, vector<1x128xf32>
    %4 = vector.broadcast %3 : vector<1x128xf32> to vector<8x128xf32>
    %5 = arith.addf %2, %4 : vector<8x128xf32>
    %6 = arith.negf %5 : vector<8x128xf32>
    %7 = math.exp %6 : vector<8x128xf32>
    %cst_5 = arith.constant 1.000000e+00 : f32
    %8 = vector.broadcast %cst_5 : f32 to vector<8x128xf32>
    %9 = arith.addf %8, %7 : vector<8x128xf32>
    %10 = arith.divf %8, %9 : vector<8x128xf32>
    %c0_6 = arith.constant 0 : index
    %c0_7 = arith.constant 0 : index
    %11 = vector.load %arg3[%c0_6, %c0_7] : memref<128x16xf32, #tpu.memory_space<vmem>>, vector<128x16xf32>
    %cst_8 = arith.constant dense<0.000000e+00> : vector<8x16xf32>
    %12 = tpu.matmul %10, %11, %cst_8 {dimension_numbers = #tpu.dot_dimension_numbers<[1], [0], [0], [1], [0, 0, 1, 1], [], []>} : vector<8x128xf32>, vector<128x16xf32>, vector<8x16xf32> -> vector<8x16xf32>
    %c0_9 = arith.constant 0 : index
    %c0_10 = arith.constant 0 : index
    %13 = vector.load %arg4[%c0_9, %c0_10] : memref<1x16xf32, #tpu.memory_space<vmem>>, vector<1x16xf32>
    %14 = vector.broadcast %13 : vector<1x16xf32> to vector<8x16xf32>
    %15 = arith.addf %12, %14 : vector<8x16xf32>
    %c0_11 = arith.constant 0 : index
    %c0_12 = arith.constant 0 : index
    %16 = vector.load %arg5[%c0_11, %c0_12] : memref<8x16xf32, #tpu.memory_space<vmem>>, vector<8x16xf32>
    tpu.vector_store %arg5[%c0_11, %c0_12], %15 {strides = array<i32>} : memref<8x16xf32, #tpu.memory_space<vmem>>, vector<8x16xf32>,
    return
  }
}

</mosaic_0001>

<bundles_post_ra>
// kernel: _forward.1
= control target key start
LH: loop header
LB: loop body
LE: loop exit
PB: predicated region body
PF: predicated region fallthrough
CT: control target
= control target key end

     0   :  { %v356_v3 = vmov 0.0|0.0   ;;  %vm357_vm0 = vmmov 0   ;;  %v358_v6 = vmov 0.0   ;;  %s471_s0 = inlined_call_operand.vmem [shape: f32[8,32], index: 0, kind: input, shape index: {}]   ;;  %s472_s1 = inlined_call_operand.vmem [shape: f32[32,128], index: 1, kind: input, shape index: {}]   ;;  %s473_s2 = inlined_call_operand.vmem [shape: f32[1,128], index: 2, kind: input, shape index: {}]   ;;  %s474_s3 = inlined_call_operand.vmem [shape: f32[128,16], index: 3, kind: input, shape index: {}]   ;;  %s475_s4 = inlined_call_operand.vmem [shape: f32[1,16], index: 4, kind: input, shape index: {}]   ;;  %s476_s5 = inlined_call_operand.hbm [shape: f32[8,16], index: 5, kind: output, shape index: {}]  }
   0x1   :  { %v22_v0 = vld [vmem:[%s472_s1] sm:$0xff]  ;;  %v23_v1 = vld [vmem:[%s472_s1 + $0x8] sm:$0xff]  ;;  %v24_v2 = vld [vmem:[%s472_s1 + $0x10] sm:$0xff]  ;;  %294 = vmatprep.subr.bf16.mxu0 %v356_v3  ;;  %256 = vmatprep.mubr.msk.f32.mxu0 %vm357_vm0, %v358_v6 }
   0x2   :  { %v295_v4 = vpack.c.bf16 %v23_v1, %v22_v0  ;;  %v25_v5 = vld [vmem:[%s472_s1 + $0x18] sm:$0xff]  ;;  %v113_v7 = vld [vmem:[%s474_s3] sm:$0xff]  ;;  %300 = vmatprep.subr.bf16.mxu1 %v356_v3  ;;  %v114_v8 = vld [vmem:[%s474_s3 + $0x8] sm:$0xff]  ;;  %291 = vmatprep.mubr.msk.f32.mxu1 %vm357_vm0, %v358_v6 }
   0x3   :  { %10 = vsyncpa [#allocation3], 0  ;;  %v298_v9 = vpack.c.bf16 %v25_v5, %v24_v2  ;;  %v301_v10 = vpack.c.bf16 %v114_v8, %v113_v7  ;;  %v21_v11 = vld [vmem:[%s471_s0] sm:$0xff]  ;;  %vm33_vm1 = vcmask 261120   ;;  %v115_v12 = vld [vmem:[%s474_s3 + $0x10] sm:$0xff]  ;;  %s359_s10 = smov [#allocation2]  }
   0x4   :  { %296 = vmatpush3.bf16.msra.mxu0 %v295_v4  ;;  %v116_v13 = vld [vmem:[%s474_s3 + $0x18] sm:$0xff]  ;;  %v117_v15 = vld [vmem:[%s474_s3 + $0x20] sm:$0xff]  ;;  %v118_v16 = vld [vmem:[%s474_s3 + $0x28] sm:$0xff]  ;;  %s214_s11 = sshll.u32 %s359_s10, 4  ;;  %vm206_vm2 = vcmask 130048   ;;  %s215_s11 = int_to_ptr.vmem [resolvable:$true] %s214_s11 }
   0x5   :  { %297 = vmatprep.subr.bf16.mxu0 %v356_v3  ;;  %302 = vmatpush3.bf16.msra.mxu1 %v301_v10  ;;  %v304_v14 = vpack.c.bf16 %v116_v13, %v115_v12  ;;  %v307_v17 = vpack.c.bf16 %v118_v16, %v117_v15  ;;  %v119_v18 = vld [vmem:[%s474_s3 + $0x30] sm:$0xff]  ;;  %v120_v19 = vld [vmem:[%s474_s3 + $0x38] sm:$0xff]  ;;  %v121_v21 = vld [vmem:[%s474_s3 + $0x40] sm:$0xff]  ;;  %p337_p1 = scmp.lt.s32.totalorder %s215_s11, %s215_s11 }
   0x6   :  { %303 = vmatprep.subr.bf16.mxu1 %v356_v3  ;;  %v310_v20 = vpack.c.bf16 %v120_v19, %v119_v18  ;;  %v122_v22 = vld [vmem:[%s474_s3 + $0x48] sm:$0xff]  ;;  %v123_v24 = vld [vmem:[%s474_s3 + $0x50] sm:$0xff]  ;;  %v124_v25 = vld [vmem:[%s474_s3 + $0x58] sm:$0xff] }
   0x7   :  { %v313_v23 = vpack.c.bf16 %v122_v22, %v121_v21  ;;  %v316_v26 = vpack.c.bf16 %v124_v25, %v123_v24  ;;  %v125_v27 = vld [vmem:[%s474_s3 + $0x60] sm:$0xff]  ;;  %v126_v28 = vld [vmem:[%s474_s3 + $0x68] sm:$0xff]  ;;  %v127_v30 = vld [vmem:[%s474_s3 + $0x70] sm:$0xff] }
   0x8   :  { %299 = vmatpush3.bf16.msra.mxu0 %v298_v9  ;;  %v319_v29 = vpack.c.bf16 %v126_v28, %v125_v27  ;;  %v128_v31 = vld [vmem:[%s474_s3 + $0x78] sm:$0xff]  ;;  %v222_v33 = vld [vmem:[%s473_s2] ss:$0 sm:$0xff]  ;;  %s332_s2 = scalar_lea.vmem %s215_s11, 128 }
   0x9   :  { %305 = vmatpush3.bf16.msra.mxu1 %v304_v14  ;;  %v322_v32 = vpack.c.bf16 %v128_v31, %v127_v30  ;;  %v225_v41 = vld [vmem:[%s475_s4] ss:$0 sm:$0xff]  ;;  %p333_p0 = scmp.ne.s32.totalorder %s215_s11, %s332_s2  ;;  %p338_p2 = scmp.lt.s32.totalorder %s332_s2, %s332_s2 }
   0xa   :  { %306 = vmatprep.subr.bf16.mxu1 %v356_v3 }
   0xb   :  { %257 = vmatmul.mubr.msk.f32.vlgmr.msra.gmra.mrb[0].mxu0 %vm33_vm1, %v21_v11  ;;  %p339_p3 = por %p338_p2, %p337_p1 }
   0xd   :  { %308 = vmatpush3.bf16.msra.mxu1 %v307_v17  ;;  %p340_p4 = pnand %p339_p3, %p333_p0 }
   0xe   :  { %309 = vmatprep.subr.bf16.mxu1 %v356_v3 }
  0x11   :  { %311 = vmatpush3.bf16.msra.mxu1 %v310_v20 }
  0x12   :  { %312 = vmatprep.subr.bf16.mxu1 %v356_v3 }
  0x15   :  { %314 = vmatpush3.bf16.msra.mxu1 %v313_v23 }
  0x16   :  { %315 = vmatprep.subr.bf16.mxu1 %v356_v3 }
  0x19   :  { %317 = vmatpush3.bf16.msra.mxu1 %v316_v26 }
  0x1a   :  { %318 = vmatprep.subr.bf16.mxu1 %v356_v3 }
  0x1d   :  { %320 = vmatpush3.bf16.msra.mxu1 %v319_v29 }
  0x1e   :  { %321 = vmatprep.subr.bf16.mxu1 %v356_v3 }
  0x21   :  { %323 = vmatpush3.bf16.msra.mxu1 %v322_v32 }
  0xde   :  { %v103_v34 = vpop.f32.mrb[0].mxu0 }
  0xdf   :  { %v104_v35 = vadd.f32 %v222_v33, %v103_v34  ;;  %v258_v36 = vpop.f32.mrb[1].mxu0 }
  0xe1   :  { %v224_v37 = vmul.f32 -1.442695, %v104_v35 }
  0xe3   :  { %328 = vpow2.f32 %v224_v37 }
  0xed   :  { %v329_v38 = vpop.eup %328 }
  0xee   :  { %v110_v39 = vadd.f32 1.0, %v329_v38 }
  0xf0   :  { %330 = vrcp.f32 %v110_v39 }
  0xfa   :  { %v331_v40 = vpop.eup %330 }
  0xfb   :  { %292 = vmatmul.mubr.f32.vlgmr.msra.gmra.mrb[0].mxu1 %v331_v40 }
 0x1ce   :  { %v202_v42 = vpop.f32.mrb[0].mxu1 }
 0x1cf   :  { %v203_v43 = vadd.f32 %v225_v41, %v202_v42  ;;  %v293_v44 = vpop.f32.mrb[1].mxu1 }
 0x1d1   :  { %207 = vst.msk [vmem:[#allocation2] sm:$0xff] %vm206_vm2, %v203_v43 }
 0x1d2   :  { %343 = shalt.err (!%p340_p4)
}
 0x1d3   :  { %s344_s0 = scalar_lea.hbm %s476_s5, 128 }
 0x1d4   :  { %p345_p5 = scmp.ne.s32.totalorder %s476_s5, %s344_s0  ;;  %p348_p6 = scmp.lt.u32.totalorder %s344_s0, %s476_s5 }
 0x1d6   :  { %p350_p7 = pnand %p348_p6, %p345_p5 }
 0x1d8   :  { %353 = shalt.err (!%p350_p7)
}
 0x1d9   :  { %217 = dma.vmem_to_hbm [thread:$0]  %s215_s11, 128, %s476_s5, [#allocation3]  }
 0x1da   :  { %354 = dma.done.wait [#allocation3], 128  }
 0x1db   :  { %355 = vsyncadd [#allocation3], 4294967168 }
 0x1dc   :  { %221 = vsyncpa [#allocation3], 1 }

</bundles_post_ra>
